<compile_context>
chip_gen: v5e
topology: v5e:2x2
jax: 0.10.0
libtpu: 0.0.40
codegen_flags: <defaults>
</compile_context>

<pallas_src>
import math

import jax
import jax.numpy as jnp
from jax.experimental import pallas as pl
from jax.experimental.pallas import tpu as pltpu


_H0 = 512           # hidden0 width
_H1 = 256           # hidden1 width
_TILE_B_CAP = 2048  # max batch tile; intermediates stay well under the VMEM limit
_LEAKY_SLOPE = 0.2
_SMALL_K = 16       # below this, layer-0 contraction runs on the VPU, not the MXU


def _round_up(v, m):
    return (v + m - 1) // m * m


def _discriminator_kernel(x_ref, w0_ref, b0_ref, w1_ref, b1_ref,
                          w2_ref, b2_ref, o_ref):
    """Fused 3-layer MLP for one batch tile."""
    x = x_ref[...]                       # (TILE_B, F) float32
    tile_b, n_feat = x.shape
    n_out = o_ref.shape[-1]              # real (unpadded) output width

    # ---- hidden0: Linear(F, 512) + LeakyReLU(0.2) ----
    if n_feat <= _SMALL_K:
        # Degenerate contraction dim (<4% MXU utilization): do F broadcast-FMAs
        # on the VPU instead, keeping the MXU slot free for the big matmuls.
        w0 = w0_ref[...].astype(jnp.float32)                  # (F, 512), hoisted cast
        acc0 = jnp.zeros((tile_b, w0.shape[1]), jnp.float32)
        for k in range(n_feat):                               # static unroll
            acc0 = acc0 + x[:, k:k + 1] * w0[k:k + 1, :]
        h0 = acc0 + b0_ref[...]
    else:
        h0 = jnp.dot(x.astype(jnp.bfloat16), w0_ref[...],
                     preferred_element_type=jnp.float32) + b0_ref[...]
    h0 = jnp.maximum(h0, _LEAKY_SLOPE * h0)

    # ---- hidden1: Linear(512, 256) + LeakyReLU(0.2)  (bf16 MXU, f32 acc) ----
    h1 = jnp.dot(h0.astype(jnp.bfloat16), w1_ref[...],
                 preferred_element_type=jnp.float32) + b1_ref[...]
    h1 = jnp.maximum(h1, _LEAKY_SLOPE * h1)

    # ---- out: Linear(256, n_out) + Sigmoid ----
    # The dot runs at the MXU-native (128-lane-padded) width of w2; only the
    # real n_out lanes are activated and stored (narrow HBM writeback).
    z = jnp.dot(h1.astype(jnp.bfloat16), w2_ref[...],
                preferred_element_type=jnp.float32) + b2_ref[...]
    z = z[:, :n_out]
    # sigmoid = 1 / (1 + exp(-z)); exp + approx reciprocal both go to the EUP slot
    o_ref[...] = pl.reciprocal(1.0 + jnp.exp(-z), approx=True).astype(o_ref.dtype)


def discriminator_forward(x, params):
    """x: [batch, n_features] f32; returns [batch, n_out] f32."""
    batch, n_feat = x.shape
    n_out = params["w2"].shape[1]

    tile_b = min(_TILE_B_CAP, _round_up(max(batch, 1), 8))
    batch_p = _round_up(batch, tile_b)
    if batch_p != batch:                       # pad so the grid divides evenly
        x = jnp.pad(x, ((0, batch_p - batch), (0, 0)))

    # MXU-friendly final-layer weights: zero-pad n_out -> multiple of 128 lanes.
    # Only the first n_out lanes are ever stored, so the pad columns are dead.
    n_out_pad = _round_up(max(n_out, 1), 128)
    w2, b2 = params["w2"], params["b2"]
    if n_out != n_out_pad:
        w2 = jnp.pad(w2, ((0, 0), (0, n_out_pad - n_out)))
        b2 = jnp.pad(b2, ((0, 0), (0, n_out_pad - n_out)))

    grid = (batch_p // tile_b,)
    resident = lambda i: (0, 0)   # weights/biases: same block every step -> VMEM-resident

    flops = 2 * batch_p * (n_feat * _H0 + _H0 * _H1 + _H1 * n_out_pad)
    bytes_accessed = (
        int(x.size) * x.dtype.itemsize
        + sum(int(v.size) * v.dtype.itemsize
              for v in (params["w0"], params["b0"], params["w1"], params["b1"], w2, b2))
        + batch_p * n_out * 4)

    out_p = pl.pallas_call(
        _discriminator_kernel,
        out_shape=jax.ShapeDtypeStruct((batch_p, n_out), jnp.float32),
        grid=grid,
        in_specs=[
            pl.BlockSpec((tile_b, n_feat), lambda i: (i, 0)),   # x (tiled over batch)
            pl.BlockSpec((n_feat, _H0), resident),              # w0
            pl.BlockSpec((1, _H0), resident),                   # b0
            pl.BlockSpec((_H0, _H1), resident),                 # w1
            pl.BlockSpec((1, _H1), resident),                   # b1
            pl.BlockSpec((_H1, n_out_pad), resident),           # w2 (lane-padded)
            pl.BlockSpec((1, n_out_pad), resident),             # b2 (lane-padded)
        ],
        out_specs=pl.BlockSpec((tile_b, n_out), lambda i: (i, 0)),   # narrow output
        compiler_params=pltpu.CompilerParams(
            dimension_semantics=("parallel",),   # both TensorCores on v7x; no-op on v5e/v6e
            vmem_limit_bytes=32 * 1024 * 1024,
        ),
        cost_estimate=pl.CostEstimate(
            flops=flops,
            transcendentals=batch_p * n_out,
            bytes_accessed=bytes_accessed,
        ),
    )(x, params["w0"], params["b0"], params["w1"], params["b1"], w2, b2)

    return out_p[:batch] if batch_p != batch else out_p


def init_params(key, n_features=1, n_out=1):
    """PyTorch nn.Linear default init (U(-1/sqrt(fan_in), 1/sqrt(fan_in))).

    Weights stored bf16 (MXU-native operands); biases stay f32 (added post-accumulation).
    """
    ks = jax.random.split(key, 6)

    def linear(kw, kb, fan_in, fan_out):
        bound = 1.0 / math.sqrt(fan_in)
        w = jax.random.uniform(kw, (fan_in, fan_out), jnp.float32, -bound, bound)
        b = jax.random.uniform(kb, (1, fan_out), jnp.float32, -bound, bound)
        return w.astype(jnp.bfloat16), b

    w0, b0 = linear(ks[0], ks[1], n_features, _H0)
    w1, b1 = linear(ks[2], ks[3], _H0, _H1)
    w2, b2 = linear(ks[4], ks[5], _H1, n_out)
    return {"w0": w0, "b0": b0, "w1": w1, "b1": b1, "w2": w2, "b2": b2}


def _reference_forward(x, p):
    """Pure-JAX f32 reference (same bf16 weight values, f32 math)."""
    w0 = p["w0"].astype(jnp.float32)
    w1 = p["w1"].astype(jnp.float32)
    w2 = p["w2"].astype(jnp.float32)
    h0 = x @ w0 + p["b0"]
    h0 = jnp.where(h0 > 0, h0, _LEAKY_SLOPE * h0)
    h1 = h0 @ w1 + p["b1"]
    h1 = jnp.where(h1 > 0, h1, _LEAKY_SLOPE * h1)
    z = h1 @ w2 + p["b2"]
    return jax.nn.sigmoid(z)


if __name__ == "__main__":
    key = jax.random.PRNGKey(0)
    k_param, k_x = jax.random.split(key)

    n_features = 4   # dimension of input data samples
    n_out = 1
    batch = 8

    params = init_params(k_param, n_features=n_features, n_out=n_out)
    x = jax.random.normal(k_x, (batch, n_features), dtype=jnp.float32)

    out = discriminator_forward(x, params)
    out = jax.block_until_ready(out)

    ref = _reference_forward(x, params)
    assert out.shape == (batch, n_out)
    # bf16 MXU operands + approx reciprocal -> loosen tolerance vs pure-f32 reference
    assert jnp.allclose(out, ref, atol=2e-2, rtol=2e-2), "mismatch vs reference"

    print("KERNEL_OK")
</pallas_src>

<mosaic_0001>
module attributes {stable_mosaic.version = 11 : i64} {
  func.func @_discriminator_kernel(%arg0: i32, %arg1: memref<8x4xf32, #tpu.memory_space<vmem>>, %arg2: memref<4x512xbf16, #tpu.memory_space<vmem>>, %arg3: memref<1x512xf32, #tpu.memory_space<vmem>>, %arg4: memref<512x256xbf16, #tpu.memory_space<vmem>>, %arg5: memref<1x256xf32, #tpu.memory_space<vmem>>, %arg6: memref<256x128xbf16, #tpu.memory_space<vmem>>, %arg7: memref<1x128xf32, #tpu.memory_space<vmem>>, %arg8: memref<8x1xf32, #tpu.memory_space<vmem>>) attributes {dimension_semantics = [#tpu.dimension_semantics<parallel>], iteration_bounds = array<i64: 1>, scalar_prefetch = 0 : i64, scratch_operands = 0 : i64, tpu.core_type = #tpu.core_type<tc>, window_params = [{transform_indices = @transform_0, window_bounds = array<i64: 8, 4>}, {pipeline_mode = #tpu.pipeline_mode<synchronous>, transform_indices = @transform_1, window_bounds = array<i64: 4, 512>}, {pipeline_mode = #tpu.pipeline_mode<synchronous>, transform_indices = @transform_2, window_bounds = array<i64: 1, 512>}, {pipeline_mode = #tpu.pipeline_mode<synchronous>, transform_indices = @transform_3, window_bounds = array<i64: 512, 256>}, {pipeline_mode = #tpu.pipeline_mode<synchronous>, transform_indices = @transform_4, window_bounds = array<i64: 1, 256>}, {pipeline_mode = #tpu.pipeline_mode<synchronous>, transform_indices = @transform_5, window_bounds = array<i64: 256, 128>}, {pipeline_mode = #tpu.pipeline_mode<synchronous>, transform_indices = @transform_6, window_bounds = array<i64: 1, 128>}, {transform_indices = @transform_7, window_bounds = array<i64: 8, 1>}]} {
    %c0 = arith.constant 0 : index
    %c0_0 = arith.constant 0 : index
    %0 = vector.load %arg1[%c0, %c0_0] : memref<8x4xf32, #tpu.memory_space<vmem>>, vector<8x4xf32>
    %c0_1 = arith.constant 0 : index
    %c0_2 = arith.constant 0 : index
    %1 = vector.load %arg2[%c0_1, %c0_2] : memref<4x512xbf16, #tpu.memory_space<vmem>>, vector<4x512xbf16>
    %2 = arith.extf %1 : vector<4x512xbf16> to vector<4x512xf32>
    %cst = arith.constant 0.000000e+00 : f32
    %3 = vector.broadcast %cst : f32 to vector<8x512xf32>
    %4 = vector.extract_strided_slice %0 {offsets = [0, 0], sizes = [8, 1], strides = [1, 1]} : vector<8x4xf32> to vector<8x1xf32>
    %5 = vector.extract_strided_slice %2 {offsets = [0, 0], sizes = [1, 512], strides = [1, 1]} : vector<4x512xf32> to vector<1x512xf32>
    %6 = vector.broadcast %4 : vector<8x1xf32> to vector<8x512xf32>
    %7 = vector.broadcast %5 : vector<1x512xf32> to vector<8x512xf32>
    %8 = arith.mulf %6, %7 : vector<8x512xf32>
    %9 = arith.addf %3, %8 : vector<8x512xf32>
    %10 = vector.extract_strided_slice %0 {offsets = [0, 1], sizes = [8, 1], strides = [1, 1]} : vector<8x4xf32> to vector<8x1xf32>
    %11 = vector.extract_strided_slice %2 {offsets = [1, 0], sizes = [1, 512], strides = [1, 1]} : vector<4x512xf32> to vector<1x512xf32>
    %12 = vector.broadcast %10 : vector<8x1xf32> to vector<8x512xf32>
    %13 = vector.broadcast %11 : vector<1x512xf32> to vector<8x512xf32>
    %14 = arith.mulf %12, %13 : vector<8x512xf32>
    %15 = arith.addf %9, %14 : vector<8x512xf32>
    %16 = vector.extract_strided_slice %0 {offsets = [0, 2], sizes = [8, 1], strides = [1, 1]} : vector<8x4xf32> to vector<8x1xf32>
    %17 = vector.extract_strided_slice %2 {offsets = [2, 0], sizes = [1, 512], strides = [1, 1]} : vector<4x512xf32> to vector<1x512xf32>
    %18 = vector.broadcast %16 : vector<8x1xf32> to vector<8x512xf32>
    %19 = vector.broadcast %17 : vector<1x512xf32> to vector<8x512xf32>
    %20 = arith.mulf %18, %19 : vector<8x512xf32>
    %21 = arith.addf %15, %20 : vector<8x512xf32>
    %22 = vector.extract_strided_slice %0 {offsets = [0, 3], sizes = [8, 1], strides = [1, 1]} : vector<8x4xf32> to vector<8x1xf32>
    %23 = vector.extract_strided_slice %2 {offsets = [3, 0], sizes = [1, 512], strides = [1, 1]} : vector<4x512xf32> to vector<1x512xf32>
    %24 = vector.broadcast %22 : vector<8x1xf32> to vector<8x512xf32>
    %25 = vector.broadcast %23 : vector<1x512xf32> to vector<8x512xf32>
    %26 = arith.mulf %24, %25 : vector<8x512xf32>
    %27 = arith.addf %21, %26 : vector<8x512xf32>
    %c0_3 = arith.constant 0 : index
    %c0_4 = arith.constant 0 : index
    %28 = vector.load %arg3[%c0_3, %c0_4] : memref<1x512xf32, #tpu.memory_space<vmem>>, vector<1x512xf32>
    %29 = vector.broadcast %28 : vector<1x512xf32> to vector<8x512xf32>
    %30 = arith.addf %27, %29 : vector<8x512xf32>
    %cst_5 = arith.constant 2.000000e-01 : f32
    %31 = vector.broadcast %cst_5 : f32 to vector<8x512xf32>
    %32 = arith.mulf %31, %30 : vector<8x512xf32>
    %33 = arith.maximumf %30, %32 : vector<8x512xf32>
    %34 = arith.truncf %33 : vector<8x512xf32> to vector<8x512xbf16>
    %c0_6 = arith.constant 0 : index
    %c0_7 = arith.constant 0 : index
    %35 = vector.load %arg4[%c0_6, %c0_7] : memref<512x256xbf16, #tpu.memory_space<vmem>>, vector<512x256xbf16>
    %cst_8 = arith.constant dense<0.000000e+00> : vector<8x256xf32>
    %36 = tpu.matmul %34, %35, %cst_8 {dimension_numbers = #tpu.dot_dimension_numbers<[1], [0], [0], [1], [0, 0, 1, 1], [], []>} : vector<8x512xbf16>, vector<512x256xbf16>, vector<8x256xf32> -> vector<8x256xf32>
    %c0_9 = arith.constant 0 : index
    %c0_10 = arith.constant 0 : index
    %37 = vector.load %arg5[%c0_9, %c0_10] : memref<1x256xf32, #tpu.memory_space<vmem>>, vector<1x256xf32>
    %38 = vector.broadcast %37 : vector<1x256xf32> to vector<8x256xf32>
    %39 = arith.addf %36, %38 : vector<8x256xf32>
    %cst_11 = arith.constant 2.000000e-01 : f32
    %40 = vector.broadcast %cst_11 : f32 to vector<8x256xf32>
    %41 = arith.mulf %40, %39 : vector<8x256xf32>
    %42 = arith.maximumf %39, %41 : vector<8x256xf32>
    %43 = arith.truncf %42 : vector<8x256xf32> to vector<8x256xbf16>
    %c0_12 = arith.constant 0 : index
    %c0_13 = arith.constant 0 : index
    %44 = vector.load %arg6[%c0_12, %c0_13] : memref<256x128xbf16, #tpu.memory_space<vmem>>, vector<256x128xbf16>
    %cst_14 = arith.constant dense<0.000000e+00> : vector<8x128xf32>
    %45 = tpu.matmul %43, %44, %cst_14 {dimension_numbers = #tpu.dot_dimension_numbers<[1], [0], [0], [1], [0, 0, 1, 1], [], []>} : vector<8x256xbf16>, vector<256x128xbf16>, vector<8x128xf32> -> vector<8x128xf32>
    %c0_15 = arith.constant 0 : index
    %c0_16 = arith.constant 0 : index
    %46 = vector.load %arg7[%c0_15, %c0_16] : memref<1x128xf32, #tpu.memory_space<vmem>>, vector<1x128xf32>
    %47 = vector.broadcast %46 : vector<1x128xf32> to vector<8x128xf32>
    %48 = arith.addf %45, %47 : vector<8x128xf32>
    %49 = vector.extract_strided_slice %48 {offsets = [0, 0], sizes = [8, 1], strides = [1, 1]} : vector<8x128xf32> to vector<8x1xf32>
    %cst_17 = arith.constant 0.000000e+00 : f32
    %50 = vector.broadcast %cst_17 : f32 to vector<8x1xf32>
    %51 = arith.subf %50, %49 : vector<8x1xf32>
    %52 = math.exp %51 : vector<8x1xf32>
    %cst_18 = arith.constant 1.000000e+00 : f32
    %53 = vector.broadcast %cst_18 : f32 to vector<8x1xf32>
    %54 = arith.addf %53, %52 : vector<8x1xf32>
    %55 = tpu.reciprocal %54 {approx = true} : vector<8x1xf32> -> vector<8x1xf32>
    %c0_19 = arith.constant 0 : index
    %c0_20 = arith.constant 0 : index
    %56 = vector.load %arg8[%c0_19, %c0_20] : memref<8x1xf32, #tpu.memory_space<vmem>>, vector<8x1xf32>
    tpu.vector_store %arg8[%c0_19, %c0_20], %55 {strides = array<i32>} : memref<8x1xf32, #tpu.memory_space<vmem>>, vector<8x1xf32>,
    return
  }
  func.func @transform_0(%arg0: i32) -> (i32, i32) {
    %c0_i32 = arith.constant 0 : i32
    %c0_i32_0 = arith.constant 0 : i32
    return %arg0, %c0_i32 : i32, i32
  }
  func.func @transform_1(%arg0: i32) -> (i32, i32) {
    %c0_i32 = arith.constant 0 : i32
    %c0_i32_0 = arith.constant 0 : i32
    %c0_i32_1 = arith.constant 0 : i32
    return %c0_i32, %c0_i32_0 : i32, i32
  }
  func.func @transform_2(%arg0: i32) -> (i32, i32) {
    %c0_i32 = arith.constant 0 : i32
    %c0_i32_0 = arith.constant 0 : i32
    %c0_i32_1 = arith.constant 0 : i32
    return %c0_i32, %c0_i32_0 : i32, i32
  }
  func.func @transform_3(%arg0: i32) -> (i32, i32) {
    %c0_i32 = arith.constant 0 : i32
    %c0_i32_0 = arith.constant 0 : i32
    %c0_i32_1 = arith.constant 0 : i32
    return %c0_i32, %c0_i32_0 : i32, i32
  }
  func.func @transform_4(%arg0: i32) -> (i32, i32) {
    %c0_i32 = arith.constant 0 : i32
    %c0_i32_0 = arith.constant 0 : i32
    %c0_i32_1 = arith.constant 0 : i32
    return %c0_i32, %c0_i32_0 : i32, i32
  }
  func.func @transform_5(%arg0: i32) -> (i32, i32) {
    %c0_i32 = arith.constant 0 : i32
    %c0_i32_0 = arith.constant 0 : i32
    %c0_i32_1 = arith.constant 0 : i32
    return %c0_i32, %c0_i32_0 : i32, i32
  }
  func.func @transform_6(%arg0: i32) -> (i32, i32) {
    %c0_i32 = arith.constant 0 : i32
    %c0_i32_0 = arith.constant 0 : i32
    %c0_i32_1 = arith.constant 0 : i32
    return %c0_i32, %c0_i32_0 : i32, i32
  }
  func.func @transform_7(%arg0: i32) -> (i32, i32) {
    %c0_i32 = arith.constant 0 : i32
    %c0_i32_0 = arith.constant 0 : i32
    return %arg0, %c0_i32 : i32, i32
  }
}

</mosaic_0001>

<bundles_post_ra>
// kernel: tpu_custom_call.1
= control target key start
LH: loop header
LB: loop body
LE: loop exit
PB: predicated region body
PF: predicated region fallthrough
CT: control target
= control target key end

     0   :  { %12 = vsyncpa [#allocation3], 0  ;;  %s1447_s0 = inlined_call_operand.vmem [shape: f32[8,4], index: 0, kind: input, shape index: {}]   ;;  %s1448_s1 = inlined_call_operand.vmem [shape: bf16[4,512], index: 1, kind: input, shape index: {}]   ;;  %s1449_s2 = inlined_call_operand.vmem [shape: f32[1,512], index: 2, kind: input, shape index: {}]   ;;  %s1450_s3 = inlined_call_operand.hbm [shape: bf16[512,256], index: 3, kind: input, shape index: {}]   ;;  %s1451_s4 = inlined_call_operand.vmem [shape: f32[1,256], index: 4, kind: input, shape index: {}]   ;;  %s1452_s5 = inlined_call_operand.hbm [shape: bf16[256,128], index: 5, kind: input, shape index: {}]   ;;  %s1453_s6 = inlined_call_operand.vmem [shape: f32[1,128], index: 6, kind: input, shape index: {}]   ;;  %s1454_s7 = inlined_call_operand.vmem [shape: f32[8,1], index: 7, kind: output, shape index: {}]  }
   0x1   :  { %s24_s26 = sshll.u32 %s1450_s3, 4  ;;  %s25_s26 = int_to_ptr.hbm [resolvable:$true] %s24_s26 }
   0x2   :  { %13 = vsyncpa [#allocation5], 0  ;;  %s1330_s27 = smov [#allocation2]   ;;  %s39_s8 = sshll.u32 %s1452_s5, 4  ;;  %s40_s8 = int_to_ptr.hbm [resolvable:$true] %s39_s8 }
   0x3   :  { %s26_s28 = sshll.u32 %s1330_s27, 4  ;;  %s1331_s9 = smov 128   ;;  %s27_s28 = int_to_ptr.vmem [resolvable:$true] %s26_s28 }
   0x4   :  { %s1332_s10 = smov 8   ;;  %s1333_s11 = smov [#allocation4]  }
   0x5   :  { %32 = dma.hbm_to_vmem [thread:$0]  %s25_s26, 8192, %s27_s28, [#allocation3], %s1331_s9, %s1331_s9, %s1332_s10  }
   0x6   :  { %s41_s12 = sshll.u32 %s1333_s11, 4  ;;  %s1334_s13 = smov 64   ;;  %s42_s12 = int_to_ptr.vmem [resolvable:$true] %s41_s12 }
   0x7   :  { %s1335_s14 = smov 4  }
   0x8   :  { %47 = dma.hbm_to_vmem [thread:$0]  %s40_s8, 2048, %s42_s12, [#allocation5], %s1334_s13, %s1334_s13, %s1335_s14  }
   0x9   :  { %1326 = dma.done.wait [#allocation3], 8192  }
   0xa   :  { %1327 = vsyncadd [#allocation3], 4294959104 }
   0xb   :  { %1328 = dma.done.wait [#allocation5], 2048  }
   0xc   :  { %1329 = vsyncadd [#allocation5], 4294965248  ;;  %v1336_v0 = vmov 0   ;;  %v1337_v1 = vmov 2   ;;  %v58_v2 = vld [vmem:[%s1447_s0] sm:$0xff]  ;;  %v1338_v38 = vmov 1  }
   0xd   :  { %1268 = vset.pattern.permute.xlu0 %v1336_v0  ;;  %1270 = vset.pattern.permute.xlu1 %v1337_v1  ;;  %v916_v3 = vld [vmem:[#allocation2 + $0x70] sm:$0xf]  ;;  %v1193_v4 = vld [vmem:[#allocation2 + $0x74] sm:$0xf0]  ;;  %v908_v15 = vld [vmem:[#allocation2 + $0x60] sm:$0xf] }
   0xe   :  { %64 = vperm.xlu0 %1268, %v58_v2   ;;  %114 = vperm.xlu1 %1270, %v58_v2   ;;  %v917_v5 = vor.u32 %v1193_v4, %v916_v3  ;;  %v980_v6 = vld [vmem:[#allocation2 + $0xf0] sm:$0xf]  ;;  %v1209_v7 = vld [vmem:[#allocation2 + $0xf4] sm:$0xf0]  ;;  %v1191_v16 = vld [vmem:[#allocation2 + $0x64] sm:$0xf0] }
   0xf   :  { %v1044_v8 = vld [vmem:[#allocation2 + $0x170] sm:$0xf]  ;;  %v981_v9 = vor.u32 %v1209_v7, %v980_v6  ;;  %v1225_v10 = vld [vmem:[#allocation2 + $0x174] sm:$0xf0]  ;;  %v972_v17 = vld [vmem:[#allocation2 + $0xe0] sm:$0xf]  ;;  %v909_v18 = vor.u32 %v1191_v16, %v908_v15 }
  0x10   :  { %v1108_v11 = vld [vmem:[#allocation2 + $0x1f0] sm:$0xf]  ;;  %v1241_v12 = vld [vmem:[#allocation2 + $0x1f4] sm:$0xf0]  ;;  %577 = vmatpush.bf16.msra.mxu0 %v917_v5  ;;  %v1045_v13 = vor.u32 %v1225_v10, %v1044_v8  ;;  %v1207_v19 = vld [vmem:[#allocation2 + $0xe4] sm:$0xf0] }
  0x11   :  { %v1109_v14 = vor.u32 %v1241_v12, %v1108_v11  ;;  %590 = vmatpush.bf16.msra.mxu1 %v981_v9  ;;  %v1036_v20 = vld [vmem:[#allocation2 + $0x160] sm:$0xf]  ;;  %v1223_v21 = vld [vmem:[#allocation2 + $0x164] sm:$0xf0]  ;;  %v973_v22 = vor.u32 %v1207_v19, %v972_v17  ;;  %v900_v25 = vld [vmem:[#allocation2 + $0x50] sm:$0xf] }
  0x12   :  { %603 = vmatpush.bf16.msra.mxu2 %v1045_v13  ;;  %v1100_v23 = vld [vmem:[#allocation2 + $0x1e0] sm:$0xf]  ;;  %v1239_v24 = vld [vmem:[#allocation2 + $0x1e4] sm:$0xf0]  ;;  %v1189_v26 = vld [vmem:[#allocation2 + $0x54] sm:$0xf0]  ;;  %v1037_v29 = vor.u32 %v1223_v21, %v1036_v20 }
  0x13   :  { %616 = vmatpush.bf16.msra.mxu3 %v1109_v14  ;;  %v964_v27 = vld [vmem:[#allocation2 + $0xd0] sm:$0xf]  ;;  %v1205_v28 = vld [vmem:[#allocation2 + $0xd4] sm:$0xf0]  ;;  %v1101_v30 = vor.u32 %v1239_v24, %v1100_v23  ;;  %v901_v33 = vor.u32 %v1189_v26, %v900_v25  ;;  %v892_v37 = vld [vmem:[#allocation2 + $0x40] sm:$0xf] }
  0x14   :  { %578 = vmatpush.bf16.msra.mxu0 %v909_v18  ;;  %v1028_v31 = vld [vmem:[#allocation2 + $0x150] sm:$0xf]  ;;  %v1221_v32 = vld [vmem:[#allocation2 + $0x154] sm:$0xf0]  ;;  %v965_v34 = vor.u32 %v1205_v28, %v964_v27  ;;  %v1339_v39 = vmov 3   ;;  %v59_v24 = vld [vmem:[%s1448_s1] sm:$0xff] }
  0x15   :  { %591 = vmatpush.bf16.msra.mxu1 %v973_v22  ;;  %v1092_v35 = vld [vmem:[#allocation2 + $0x1d0] sm:$0xf]  ;;  %v1237_v36 = vld [vmem:[#allocation2 + $0x1d4] sm:$0xf0]  ;;  %v1187_v40 = vld [vmem:[#allocation2 + $0x44] sm:$0xf0]  ;;  %v1029_v43 = vor.u32 %v1221_v32, %v1028_v31  ;;  %v1392_v31 = vunpack.c.l.bf16 %v59_v24 }
  0x16   :  { %1269 = vset.pattern.permute.xlu0 %v1338_v38  ;;  %1271 = vset.pattern.permute.xlu1 %v1339_v39  ;;  %v956_v41 = vld [vmem:[#allocation2 + $0xc0] sm:$0xf]  ;;  %v1203_v42 = vld [vmem:[#allocation2 + $0xc4] sm:$0xf0]  ;;  %v1093_v44 = vor.u32 %v1237_v36, %v1092_v35  ;;  %v893_v47 = vor.u32 %v1187_v40, %v892_v37  ;;  %v884_v51 = vld [vmem:[#allocation2 + $0x30] sm:$0xf]  ;;  %v1394_v36 = vunpack.c.h.bf16 %v59_v24 }
  0x17   :  { %90 = vperm.xlu0 %1269, %v58_v2   ;;  %138 = vperm.xlu1 %1271, %v58_v2   ;;  %v1020_v45 = vld [vmem:[#allocation2 + $0x140] sm:$0xf]  ;;  %v1219_v46 = vld [vmem:[#allocation2 + $0x144] sm:$0xf0]  ;;  %v957_v48 = vor.u32 %v1203_v42, %v956_v41  ;;  %v1185_v52 = vld [vmem:[#allocation2 + $0x34] sm:$0xf0] }
  0x18   :  { %604 = vmatpush.bf16.msra.mxu2 %v1037_v29  ;;  %617 = vmatpush.bf16.msra.mxu3 %v1101_v30  ;;  %v1084_v49 = vld [vmem:[#allocation2 + $0x1c0] sm:$0xf]  ;;  %v1235_v50 = vld [vmem:[#allocation2 + $0x1c4] sm:$0xf0]  ;;  %v948_v53 = vld [vmem:[#allocation2 + $0xb0] sm:$0xf]  ;;  %v1021_v55 = vor.u32 %v1219_v46, %v1020_v45  ;;  %v885_v58 = vor.u32 %v1185_v52, %v884_v51 }
  0x19   :  { %579 = vmatpush.bf16.msra.mxu0 %v901_v33  ;;  %592 = vmatpush.bf16.msra.mxu1 %v965_v34  ;;  %v1201_v54 = vld [vmem:[#allocation2 + $0xb4] sm:$0xf0]  ;;  %v1085_v56 = vor.u32 %v1235_v50, %v1084_v49  ;;  %v1012_v57 = vld [vmem:[#allocation2 + $0x130] sm:$0xf]  ;;  %v876_v1 = vld [vmem:[#allocation2 + $0x20] sm:$0xf] }
  0x1a   :  { %v949_v59 = vor.u32 %v1201_v54, %v948_v53  ;;  %v1217_v60 = vld [vmem:[#allocation2 + $0x134] sm:$0xf0]  ;;  %v1076_v61 = vld [vmem:[#allocation2 + $0x1b0] sm:$0xf]  ;;  %v1183_v2 = vld [vmem:[#allocation2 + $0x24] sm:$0xf0] }
  0x1b   :  { %v1233_v62 = vld [vmem:[#allocation2 + $0x1b4] sm:$0xf0]  ;;  %v1013_v63 = vor.u32 %v1217_v60, %v1012_v57  ;;  %v940_v3 = vld [vmem:[#allocation2 + $0xa0] sm:$0xf]  ;;  %v877_v4 = vor.u32 %v1183_v2, %v876_v1  ;;  %v1199_v5 = vld [vmem:[#allocation2 + $0xa4] sm:$0xf0] }
  0x1c   :  { %605 = vmatpush.bf16.msra.mxu2 %v1029_v43  ;;  %618 = vmatpush.bf16.msra.mxu3 %v1093_v44  ;;  %v1077_v0 = vor.u32 %v1233_v62, %v1076_v61  ;;  %v1004_v6 = vld [vmem:[#allocation2 + $0x120] sm:$0xf]  ;;  %v1215_v7 = vld [vmem:[#allocation2 + $0x124] sm:$0xf0]  ;;  %v941_v8 = vor.u32 %v1199_v5, %v940_v3  ;;  %v868_v13 = vld [vmem:[#allocation2 + $0x10] sm:$0xf] }
  0x1d   :  { %580 = vmatpush.bf16.msra.mxu0 %v893_v47  ;;  %593 = vmatpush.bf16.msra.mxu1 %v957_v48  ;;  %v1005_v9 = vor.u32 %v1215_v7, %v1004_v6  ;;  %v1068_v10 = vld [vmem:[#allocation2 + $0x1a0] sm:$0xf]  ;;  %v1231_v11 = vld [vmem:[#allocation2 + $0x1a4] sm:$0xf0]  ;;  %v1181_v14 = vld [vmem:[#allocation2 + $0x14] sm:$0xf0] }
  0x1e   :  { %v1069_v12 = vor.u32 %v1231_v11, %v1068_v10  ;;  %v869_v15 = vor.u32 %v1181_v14, %v868_v13  ;;  %v932_v16 = vld [vmem:[#allocation2 + $0x90] sm:$0xf]  ;;  %v1197_v17 = vld [vmem:[#allocation2 + $0x94] sm:$0xf0]  ;;  %v860_v26 = vld [vmem:[#allocation2] sm:$0xf] }
  0x1f   :  { %1272 = vset.pattern.permute.xlu0 %v1339_v39  ;;  %v933_v18 = vor.u32 %v1197_v17, %v932_v16  ;;  %v996_v19 = vld [vmem:[#allocation2 + $0x110] sm:$0xf]  ;;  %v1213_v20 = vld [vmem:[#allocation2 + $0x114] sm:$0xf0]  ;;  %v1179_v27 = vld [vmem:[#allocation2 + $0x4] sm:$0xf0] }
  0x20   :  { %606 = vmatpush.bf16.msra.mxu2 %v1021_v55  ;;  %619 = vmatpush.bf16.msra.mxu3 %v1085_v56  ;;  %v997_v21 = vor.u32 %v1213_v20, %v996_v19  ;;  %v1060_v22 = vld [vmem:[#allocation2 + $0x190] sm:$0xf]  ;;  %v1229_v23 = vld [vmem:[#allocation2 + $0x194] sm:$0xf0]  ;;  %v861_v28 = vor.u32 %v1179_v27, %v860_v26  ;;  %v924_v29 = vld [vmem:[#allocation2 + $0x80] sm:$0xf] }
  0x21   :  { %581 = vmatpush.bf16.msra.mxu0 %v885_v58  ;;  %594 = vmatpush.bf16.msra.mxu1 %v949_v59  ;;  %v1061_v25 = vor.u32 %v1229_v23, %v1060_v22  ;;  %v1195_v30 = vld [vmem:[#allocation2 + $0x84] sm:$0xf0]  ;;  %v988_v33 = vld [vmem:[#allocation2 + $0x100] sm:$0xf]  ;;  %v1192_v39 = vld [vmem:[#allocation2 + $0x74] sm:$0xf] }
  0x22   :  { %v925_v32 = vor.u32 %v1195_v30, %v924_v29  ;;  %v1211_v34 = vld [vmem:[#allocation2 + $0x104] sm:$0xf0]  ;;  %v1052_v35 = vld [vmem:[#allocation2 + $0x180] sm:$0xf]  ;;  %v918_v40 = vld [vmem:[#allocation2 + $0x78] sm:$0xf0] }
  0x23   :  { %v989_v37 = vor.u32 %v1211_v34, %v988_v33  ;;  %v1227_v38 = vld [vmem:[#allocation2 + $0x184] sm:$0xf0]  ;;  %v921_v42 = vor.u32 %v1192_v39, %v918_v40  ;;  %v1208_v43 = vld [vmem:[#allocation2 + $0xf4] sm:$0xf]  ;;  %v982_v44 = vld [vmem:[#allocation2 + $0xf8] sm:$0xf0] }
  0x24   :  { %607 = vmatpush.bf16.msra.mxu2 %v1013_v63  ;;  %620 = vmatpush.bf16.msra.mxu3 %v1077_v0  ;;  %v1053_v41 = vor.u32 %v1227_v38, %v1052_v35  ;;  %v1224_v45 = vld [vmem:[#allocation2 + $0x174] sm:$0xf]  ;;  %v985_v46 = vor.u32 %v1208_v43, %v982_v44  ;;  %v1046_v47 = vld [vmem:[#allocation2 + $0x178] sm:$0xf0]  ;;  %v69_v50 = vperm.slane %v1392_v31, 0  ;;  %v70_v55 = vperm.slane %v1392_v31, 4 }
  0x25   :  { %582 = vmatpush.bf16.msra.mxu0 %v877_v4  ;;  %595 = vmatpush.bf16.msra.mxu1 %v941_v8  ;;  %v1240_v48 = vld [vmem:[#allocation2 + $0x1f4] sm:$0xf]  ;;  %v1110_v49 = vld [vmem:[#allocation2 + $0x1f8] sm:$0xf0]  ;;  %v1049_v51 = vor.u32 %v1224_v45, %v1046_v47  ;;  %v1190_v53 = vld [vmem:[#allocation2 + $0x64] sm:$0xf] }
  0x26   :  { %v1113_v52 = vor.u32 %v1240_v48, %v1110_v49  ;;  %v910_v54 = vld [vmem:[#allocation2 + $0x68] sm:$0xf0]  ;;  %v71_v56 = vperm.slane %v1394_v36, 0  ;;  %v1206_v58 = vld [vmem:[#allocation2 + $0xe4] sm:$0xf]  ;;  %v72_v60 = vperm.slane %v1394_v36, 4 }
  0x27   :  { %v913_v57 = vor.u32 %v1190_v53, %v910_v54  ;;  %v974_v59 = vld [vmem:[#allocation2 + $0xe8] sm:$0xf0]  ;;  %v117_v61 = vperm.slane %v1392_v31, 2  ;;  %v1222_v63 = vld [vmem:[#allocation2 + $0x164] sm:$0xf]  ;;  %v118_v1 = vperm.slane %v1392_v31, 6 }
  0x28   :  { %608 = vmatpush.bf16.msra.mxu2 %v1005_v9  ;;  %621 = vmatpush.bf16.msra.mxu3 %v1069_v12  ;;  %v977_v62 = vor.u32 %v1206_v58, %v974_v59  ;;  %v1038_v0 = vld [vmem:[#allocation2 + $0x168] sm:$0xf0]  ;;  %v119_v2 = vperm.slane %v1394_v36, 2  ;;  %v1238_v4 = vld [vmem:[#allocation2 + $0x1e4] sm:$0xf]  ;;  %v1403_v27 = vperm.slane %v69_v50, 0 }
  0x29   :  { %583 = vmatpush.bf16.msra.mxu0 %v869_v15  ;;  %596 = vmatpush.bf16.msra.mxu1 %v933_v18  ;;  %v1041_v3 = vor.u32 %v1222_v63, %v1038_v0  ;;  %v1102_v5 = vld [vmem:[#allocation2 + $0x1e8] sm:$0xf0]  ;;  %v1188_v7 = vld [vmem:[#allocation2 + $0x54] sm:$0xf]  ;;  %v902_v8 = vld [vmem:[#allocation2 + $0x58] sm:$0xf0] }
  0x2a   :  { %v1105_v6 = vor.u32 %v1238_v4, %v1102_v5  ;;  %v1204_v9 = vld [vmem:[#allocation2 + $0xd4] sm:$0xf]  ;;  %v905_v10 = vor.u32 %v1188_v7, %v902_v8  ;;  %v966_v11 = vld [vmem:[#allocation2 + $0xd8] sm:$0xf0]  ;;  %v1186_v18 = vld [vmem:[#allocation2 + $0x44] sm:$0xf] }
  0x2b   :  { %v1220_v12 = vld [vmem:[#allocation2 + $0x154] sm:$0xf]  ;;  %v1030_v13 = vld [vmem:[#allocation2 + $0x158] sm:$0xf0]  ;;  %v969_v14 = vor.u32 %v1204_v9, %v966_v11  ;;  %v894_v20 = vld [vmem:[#allocation2 + $0x48] sm:$0xf0] }
  0x2c   :  { %609 = vmatpush.bf16.msra.mxu2 %v997_v21  ;;  %622 = vmatpush.bf16.msra.mxu3 %v1061_v25  ;;  %v1033_v15 = vor.u32 %v1220_v12, %v1030_v13  ;;  %v1236_v16 = vld [vmem:[#allocation2 + $0x1d4] sm:$0xf]  ;;  %v1094_v17 = vld [vmem:[#allocation2 + $0x1d8] sm:$0xf0]  ;;  %v1202_v21 = vld [vmem:[#allocation2 + $0xc4] sm:$0xf]  ;;  %v897_v23 = vor.u32 %v1186_v18, %v894_v20 }
  0x2d   :  { %584 = vmatpush.bf16.msra.mxu0 %v861_v28  ;;  %597 = vmatpush.bf16.msra.mxu1 %v925_v32  ;;  %v1097_v19 = vor.u32 %v1236_v16, %v1094_v17  ;;  %v958_v22 = vld [vmem:[#allocation2 + $0xc8] sm:$0xf0]  ;;  %v1218_v24 = vld [vmem:[#allocation2 + $0x144] sm:$0xf]  ;;  %v1405_v28 = vperm.slane %v70_v55, 0  ;;  %v1407_v29 = vperm.slane %v71_v56, 0 }
  0x2e   :  { %v1022_v25 = vld [vmem:[#allocation2 + $0x148] sm:$0xf0]  ;;  %v1234_v26 = vld [vmem:[#allocation2 + $0x1c4] sm:$0xf]  ;;  %v961_v30 = vor.u32 %v1202_v21, %v958_v22  ;;  %v1409_v33 = vperm.slane %v72_v60, 0  ;;  %v120_v34 = vperm.slane %v1394_v36, 6 }
  0x2f   :  { %v1086_v32 = vld [vmem:[#allocation2 + $0x1c8] sm:$0xf0]  ;;  %v1025_v35 = vor.u32 %v1218_v24, %v1022_v25  ;;  %v1412_v38 = vperm.slane %v117_v61, 2  ;;  %v1414_v39 = vperm.slane %v118_v1, 2  ;;  %v1416_v40 = vperm.slane %v119_v2, 2 }
  0x30   :  { %610 = vmatpush.bf16.msra.mxu2 %v989_v37  ;;  %623 = vmatpush.bf16.msra.mxu3 %v1053_v41  ;;  %v1089_v37 = vor.u32 %v1234_v26, %v1086_v32  ;;  %v93_v41 = vperm.slane %v1392_v31, 1  ;;  %v886_v43 = vld [vmem:[#allocation2 + $0x38] sm:$0xf0]  ;;  %v1200_v44 = vld [vmem:[#allocation2 + $0xb4] sm:$0xf]  ;;  %v94_v12 = vperm.slane %v1392_v31, 5 }
  0x31   :  { %629 = vmatpush.bf16.msrb.mxu0 %v921_v42  ;;  %642 = vmatpush.bf16.msrb.mxu1 %v985_v46  ;;  %v1184_v42 = vld [vmem:[#allocation2 + $0x34] sm:$0xf]  ;;  %v950_v46 = vld [vmem:[#allocation2 + $0xb8] sm:$0xf0]  ;;  %v1182_v53 = vld [vmem:[#allocation2 + $0x24] sm:$0xf] }
  0x32   :  { %v889_v45 = vor.u32 %v1184_v42, %v886_v43  ;;  %v1216_v47 = vld [vmem:[#allocation2 + $0x134] sm:$0xf]  ;;  %v1014_v48 = vld [vmem:[#allocation2 + $0x138] sm:$0xf0]  ;;  %v953_v49 = vor.u32 %v1200_v44, %v950_v46  ;;  %v878_v55 = vld [vmem:[#allocation2 + $0x28] sm:$0xf0] }
  0x33   :  { %v1017_v50 = vor.u32 %v1216_v47, %v1014_v48  ;;  %v1198_v56 = vld [vmem:[#allocation2 + $0xa4] sm:$0xf]  ;;  %v881_v58 = vor.u32 %v1182_v53, %v878_v55  ;;  %v1006_v60 = vld [vmem:[#allocation2 + $0x128] sm:$0xf0]  ;;  %v1180_v0 = vld [vmem:[#allocation2 + $0x14] sm:$0xf] }
  0x34   :  { %655 = vmatpush.bf16.msrb.mxu2 %v1049_v51  ;;  %668 = vmatpush.bf16.msrb.mxu3 %v1113_v52  ;;  %v1232_v51 = vld [vmem:[#allocation2 + $0x1b4] sm:$0xf]  ;;  %v1078_v52 = vld [vmem:[#allocation2 + $0x1b8] sm:$0xf0]  ;;  %v1214_v59 = vld [vmem:[#allocation2 + $0x124] sm:$0xf] }
  0x35   :  { %630 = vmatpush.bf16.msrb.mxu0 %v913_v57  ;;  %643 = vmatpush.bf16.msrb.mxu1 %v977_v62  ;;  %v1081_v54 = vor.u32 %v1232_v51, %v1078_v52  ;;  %v942_v57 = vld [vmem:[#allocation2 + $0xa8] sm:$0xf0]  ;;  %v1230_v61 = vld [vmem:[#allocation2 + $0x1a4] sm:$0xf]  ;;  %v870_v1 = vld [vmem:[#allocation2 + $0x18] sm:$0xf0]  ;;  %v1009_v2 = vor.u32 %v1214_v59, %v1006_v60 }
  0x36   :  { %v945_v62 = vor.u32 %v1198_v56, %v942_v57  ;;  %v1070_v63 = vld [vmem:[#allocation2 + $0x1a8] sm:$0xf0]  ;;  %v1196_v4 = vld [vmem:[#allocation2 + $0x94] sm:$0xf]  ;;  %v934_v5 = vld [vmem:[#allocation2 + $0x98] sm:$0xf0] }
  0x37   :  { %v998_v9 = vld [vmem:[#allocation2 + $0x118] sm:$0xf0]  ;;  %v95_v13 = vperm.slane %v1394_v36, 1  ;;  %v141_v16 = vperm.slane %v1392_v31, 3  ;;  %v142_v17 = vperm.slane %v1392_v31, 7  ;;  %v937_v18 = vor.u32 %v1196_v4, %v934_v5 }
  0x38   :  { %656 = vmatpush.bf16.msrb.mxu2 %v1041_v3  ;;  %669 = vmatpush.bf16.msrb.mxu3 %v1105_v6  ;;  %v1073_v3 = vor.u32 %v1230_v61, %v1070_v63  ;;  %v1212_v6 = vld [vmem:[#allocation2 + $0x114] sm:$0xf]  ;;  %v1062_v11 = vld [vmem:[#allocation2 + $0x198] sm:$0xf0]  ;;  %v862_v20 = vld [vmem:[#allocation2 + $0x8] sm:$0xf0] }
  0x39   :  { %631 = vmatpush.bf16.msrb.mxu0 %v905_v10  ;;  %644 = vmatpush.bf16.msrb.mxu1 %v969_v14  ;;  %v1228_v10 = vld [vmem:[#allocation2 + $0x194] sm:$0xf]  ;;  %v96_v14 = vperm.slane %v1394_v36, 5  ;;  %v143_v21 = vperm.slane %v1394_v36, 3  ;;  %v144_v22 = vperm.slane %v1394_v36, 7  ;;  %v101_v32 = vperm.slane %v93_v41, 1 }
  0x3a   :  { %v1065_v24 = vor.u32 %v1228_v10, %v1062_v11  ;;  %v1194_v25 = vld [vmem:[#allocation2 + $0x84] sm:$0xf]  ;;  %v926_v26 = vld [vmem:[#allocation2 + $0x88] sm:$0xf0]  ;;  %v103_v42 = vperm.slane %v95_v13, 1  ;;  %v149_v47 = vperm.slane %v141_v16, 3 }
  0x3b   :  { %v990_v31 = vld [vmem:[#allocation2 + $0x108] sm:$0xf0]  ;;  %v1226_v44 = vld [vmem:[#allocation2 + $0x184] sm:$0xf]  ;;  %v104_v46 = vperm.slane %v96_v14, 1  ;;  %v150_v48 = vperm.slane %v142_v17, 3 }
  0x3c   :  { %657 = vmatpush.bf16.msrb.mxu2 %v1033_v15  ;;  %670 = vmatpush.bf16.msrb.mxu3 %v1097_v19  ;;  %v873_v15 = vor.u32 %v1180_v0, %v870_v1  ;;  %v1178_v19 = vld [vmem:[#allocation2 + $0x4] sm:$0xf]  ;;  %v151_v51 = vperm.slane %v143_v21, 3  ;;  %v152_v52 = vperm.slane %v144_v22, 3  ;;  %vm850_vm0 = vcmask 7168  }
  0x3d   :  { %632 = vmatpush.bf16.msrb.mxu0 %v897_v23  ;;  %645 = vmatpush.bf16.msrb.mxu1 %v961_v30  ;;  %v1001_v23 = vor.u32 %v1212_v6, %v998_v9  ;;  %v128_v30 = vperm.slane %v120_v34, 2  ;;  %v865_v43 = vor.u32 %v1178_v19, %v862_v20 }
  0x40   :  { %658 = vmatpush.bf16.msrb.mxu2 %v1025_v35  ;;  %671 = vmatpush.bf16.msrb.mxu3 %v1089_v37  ;;  %v1210_v35 = vld [vmem:[#allocation2 + $0x104] sm:$0xf]  ;;  %v102_v37 = vperm.slane %v94_v12, 1 }
  0x41   :  { %633 = vmatpush.bf16.msrb.mxu0 %v889_v45  ;;  %646 = vmatpush.bf16.msrb.mxu1 %v953_v49  ;;  %v1054_v45 = vld [vmem:[#allocation2 + $0x188] sm:$0xf0]  ;;  %v929_v49 = vor.u32 %v1194_v25, %v926_v26  ;;  %v993_v36 = vor.u32 %v1210_v35, %v990_v31  ;;  %v1249_v31 = vld [vmem:[#allocation4 + $0x38] sm:$0xff] }
  0x44   :  { %659 = vmatpush.bf16.msrb.mxu2 %v1017_v50  ;;  %672 = vmatpush.bf16.msrb.mxu3 %v1081_v54  ;;  %v1057_v54 = vor.u32 %v1226_v44, %v1054_v45  ;;  %v1246_v44 = vld [vmem:[#allocation4 + $0x20] sm:$0xff]  ;;  %v1245_v45 = vld [vmem:[#allocation4 + $0x18] sm:$0xff] }
  0x45   :  { %634 = vmatpush.bf16.msrb.mxu0 %v881_v58  ;;  %647 = vmatpush.bf16.msrb.mxu1 %v945_v62 }
  0x48   :  { %660 = vmatpush.bf16.msrb.mxu2 %v1009_v2  ;;  %673 = vmatpush.bf16.msrb.mxu3 %v1073_v3 }
  0x49   :  { %635 = vmatpush.bf16.msrb.mxu0 %v873_v15  ;;  %648 = vmatpush.bf16.msrb.mxu1 %v937_v18 }
  0x4c   :  { %661 = vmatpush.bf16.msrb.mxu2 %v1001_v23  ;;  %674 = vmatpush.bf16.msrb.mxu3 %v1065_v24 }
  0x4d   :  { %636 = vmatpush.bf16.msrb.mxu0 %v865_v43  ;;  %649 = vmatpush.bf16.msrb.mxu1 %v929_v49  ;;  %v1247_v43 = vld [vmem:[#allocation4 + $0x28] sm:$0xff] }
  0x4e   :  { %v1243_v49 = vld [vmem:[#allocation4 + $0x8] sm:$0xff] }
  0x50   :  { %662 = vmatpush.bf16.msrb.mxu2 %v993_v36  ;;  %675 = vmatpush.bf16.msrb.mxu3 %v1057_v54  ;;  %v1253_v36 = vld [vmem:[#allocation4 + $0x58] sm:$0xff]  ;;  %v1250_v54 = vld [vmem:[#allocation4 + $0x40] sm:$0xff] }
  0x80   :  { %v65_v7 = vpop.permute.xlu0 %64  ;;  %v115_v8 = vpop.permute.xlu1 %114 }
  0x81   :  { %v81_v50 = vmul.f32 %v1403_v27, %v65_v7  ;;  %v82_v34 = vmul.f32 %v1405_v28, %v65_v7  ;;  %v83_v41 = vmul.f32 %v1407_v29, %v65_v7  ;;  %v84_v53 = vmul.f32 %v1409_v33, %v65_v7  ;;  %v161_v28 = vld [vmem:[%s1449_s2] sm:$0xf] }
  0x82   :  { %v129_v55 = vmul.f32 %v1412_v38, %v115_v8  ;;  %v130_v56 = vmul.f32 %v1414_v39, %v115_v8  ;;  %v131_v57 = vmul.f32 %v1416_v40, %v115_v8  ;;  %v132_v58 = vmul.f32 %v128_v30, %v115_v8 }
  0x83   :  { %v163_v3 = vperm.slane %v161_v28, 0  ;;  %v164_v4 = vperm.slane %v161_v28, 1  ;;  %v165_v5 = vperm.slane %v161_v28, 2  ;;  %v166_v6 = vperm.slane %v161_v28, 3 }
  0x89   :  { %v91_v27 = vpop.permute.xlu0 %90  ;;  %v139_v59 = vpop.permute.xlu1 %138 }
  0x8a   :  { %v105_v60 = vmul.f32 %v101_v32, %v91_v27  ;;  %v106_v61 = vmul.f32 %v102_v37, %v91_v27  ;;  %v107_v62 = vmul.f32 %v103_v42, %v91_v27  ;;  %v108_v63 = vmul.f32 %v104_v46, %v91_v27  ;;  %v1248_v42 = vld [vmem:[#allocation4 + $0x30] sm:$0xff]  ;;  %v1257_v46 = vld [vmem:[#allocation4 + $0x78] sm:$0xff] }
  0x8b   :  { %v153_v29 = vmul.f32 %v149_v47, %v139_v59  ;;  %v154_v33 = vmul.f32 %v150_v48, %v139_v59  ;;  %v155_v38 = vmul.f32 %v151_v51, %v139_v59  ;;  %v156_v0 = vmul.f32 %v152_v52, %v139_v59  ;;  %v1244_v47 = vld [vmem:[#allocation4 + $0x10] sm:$0xff]  ;;  %v1242_v51 = vld [vmem:[#allocation4] sm:$0xff] }
  0x8c   :  { %v109_v39 = vadd.f32 %v105_v60, %v81_v50  ;;  %v110_v40 = vadd.f32 %v106_v61, %v82_v34  ;;  %v111_v1 = vadd.f32 %v107_v62, %v83_v41  ;;  %v112_v2 = vadd.f32 %v108_v63, %v84_v53  ;;  %v1256_v48 = vld [vmem:[#allocation4 + $0x70] sm:$0xff]  ;;  %v1255_v50 = vld [vmem:[#allocation4 + $0x68] sm:$0xff]  ;;  %v1254_v52 = vld [vmem:[#allocation4 + $0x60] sm:$0xff] }
  0x8d   :  { %v1252_v34 = vld [vmem:[#allocation4 + $0x50] sm:$0xff]  ;;  %v1251_v41 = vld [vmem:[#allocation4 + $0x48] sm:$0xff]  ;;  %v251_v53 = vld [vmem:[%s1451_s4] sm:$0x3] }
  0x8e   :  { %v133_v7 = vadd.f32 %v129_v55, %v109_v39  ;;  %v134_v8 = vadd.f32 %v130_v56, %v110_v40  ;;  %v135_v9 = vadd.f32 %v131_v57, %v111_v1  ;;  %v136_v10 = vadd.f32 %v132_v58, %v112_v2 }
  0x8f   :  { %v253_v55 = vperm.slane %v251_v53, 0 }
  0x90   :  { %v157_v11 = vadd.f32 %v153_v29, %v133_v7  ;;  %v158_v12 = vadd.f32 %v154_v33, %v134_v8  ;;  %v159_v13 = vadd.f32 %v155_v38, %v135_v9  ;;  %v160_v14 = vadd.f32 %v156_v0, %v136_v10 }
  0x91   :  { %v254_v38 = vperm.slane %v251_v53, 1 }
  0x92   :  { %v171_v15 = vadd.f32 %v163_v3, %v157_v11  ;;  %v172_v16 = vadd.f32 %v164_v4, %v158_v12  ;;  %v173_v17 = vadd.f32 %v165_v5, %v159_v13  ;;  %v174_v18 = vadd.f32 %v166_v6, %v160_v14 }
  0x94   :  { %v175_v19 = vmul.f32 0.2, %v171_v15  ;;  %v176_v20 = vmul.f32 0.2, %v172_v16  ;;  %v177_v21 = vmul.f32 0.2, %v173_v17 }
  0x95   :  { %v178_v22 = vmul.f32 0.2, %v174_v18 }
  0x96   :  { %v179_v23 = vmax.f32 %v171_v15, %v175_v19  ;;  %v180_v24 = vmax.f32 %v172_v16, %v176_v20  ;;  %v181_v25 = vmax.f32 %v173_v17, %v177_v21 }
  0x97   :  { %v182_v26 = vmax.f32 %v174_v18, %v178_v22  ;;  %v1273_v18 = vld [vmem:[%s1453_s6] ss:$0 sm:$0xff] }
  0x98   :  { %v183_v30 = vpack.c.bf16 %v179_v23, %v179_v23  ;;  %v184_v32 = vpack.c.bf16 %v180_v24, %v180_v24  ;;  %v185_v35 = vpack.c.bf16 %v181_v25, %v181_v25 }
  0x99   :  { %v186_v37 = vpack.c.bf16 %v182_v26, %v182_v26 }
  0x9a   :  { %585 = vmatmul.bf16.vlgmr.msra.gmra.mxu0 %v183_v30  ;;  %598 = vmatmul.bf16.vlgmr.msra.gmra.mxu1 %v184_v32 }
  0x9b   :  { %611 = vmatmul.bf16.vlgmr.msra.gmra.mxu2 %v185_v35  ;;  %624 = vmatmul.bf16.vlgmr.msra.gmra.mxu3 %v186_v37 }
  0x9c   :  { %819 = vmatpush.bf16.msra.mxu0 %v1249_v31  ;;  %832 = vmatpush.bf16.msra.mxu1 %v1257_v46 }
  0xa0   :  { %820 = vmatpush.bf16.msra.mxu0 %v1248_v42  ;;  %833 = vmatpush.bf16.msra.mxu1 %v1256_v48 }
  0xa4   :  { %821 = vmatpush.bf16.msra.mxu0 %v1247_v43  ;;  %834 = vmatpush.bf16.msra.mxu1 %v1255_v50 }
  0xa8   :  { %822 = vmatpush.bf16.msra.mxu0 %v1246_v44  ;;  %835 = vmatpush.bf16.msra.mxu1 %v1254_v52 }
  0xaa   :  { %637 = vmatmul.bf16.vlgmr.msrb.gmra.mxu0 %v183_v30  ;;  %650 = vmatmul.bf16.vlgmr.msrb.gmra.mxu1 %v184_v32 }
  0xab   :  { %663 = vmatmul.bf16.vlgmr.msrb.gmra.mxu2 %v185_v35  ;;  %676 = vmatmul.bf16.vlgmr.msrb.gmra.mxu3 %v186_v37 }
  0xac   :  { %823 = vmatpush.bf16.msra.mxu0 %v1245_v45  ;;  %836 = vmatpush.bf16.msra.mxu1 %v1253_v36 }
  0xb0   :  { %824 = vmatpush.bf16.msra.mxu0 %v1244_v47  ;;  %837 = vmatpush.bf16.msra.mxu1 %v1252_v34 }
  0xb4   :  { %825 = vmatpush.bf16.msra.mxu0 %v1243_v49  ;;  %838 = vmatpush.bf16.msra.mxu1 %v1251_v41 }
  0xb8   :  { %826 = vmatpush.bf16.msra.mxu0 %v1242_v51  ;;  %839 = vmatpush.bf16.msra.mxu1 %v1250_v54 }
 0x117   :  { %v586_v56 = vpop.f32.mrf.mxu0  ;;  %v599_v57 = vpop.f32.mrf.mxu1 }
 0x118   :  { %v587_v58 = vadd.f32 %v586_v56, %v253_v55 }
 0x11a   :  { %v600_v27 = vadd.f32 %v599_v57, %v587_v58 }
 0x11e   :  { %v612_v59 = vpop.f32.mrf.mxu2  ;;  %v625_v60 = vpop.f32.mrf.mxu3 }
 0x11f   :  { %v613_v61 = vadd.f32 %v612_v59, %v600_v27  ;;  %v588_v62 = vpop.f32.mrf.mxu0  ;;  %v601_v63 = vpop.f32.mrf.mxu1 }
 0x121   :  { %v626_v28 = vadd.f32 %v625_v60, %v613_v61 }
 0x123   :  { %v681_v29 = vmul.f32 0.2, %v626_v28 }
 0x125   :  { %v683_v33 = vmax.f32 %v626_v28, %v681_v29 }
 0x126   :  { %v614_v0 = vpop.f32.mrf.mxu2  ;;  %v627_v39 = vpop.f32.mrf.mxu3 }
 0x127   :  { %v685_v40 = vpack.c.bf16 %v683_v33, %v683_v33  ;;  %v638_v1 = vpop.f32.mrf.mxu0  ;;  %v651_v2 = vpop.f32.mrf.mxu1 }
 0x128   :  { %v639_v3 = vadd.f32 %v638_v1, %v254_v38 }
 0x129   :  { %827 = vmatmul.bf16.vlgmr.msra.gmra.mxu0 %v685_v40 }
 0x12a   :  { %v652_v4 = vadd.f32 %v651_v2, %v639_v3 }
 0x12e   :  { %v664_v5 = vpop.f32.mrf.mxu2  ;;  %v677_v6 = vpop.f32.mrf.mxu3 }
 0x12f   :  { %v665_v7 = vadd.f32 %v664_v5, %v652_v4  ;;  %v640_v8 = vpop.f32.mrf.mxu0  ;;  %v653_v9 = vpop.f32.mrf.mxu1 }
 0x131   :  { %v678_v10 = vadd.f32 %v677_v6, %v665_v7 }
 0x133   :  { %v682_v11 = vmul.f32 0.2, %v678_v10 }
 0x135   :  { %v684_v12 = vmax.f32 %v678_v10, %v682_v11 }
 0x136   :  { %v666_v13 = vpop.f32.mrf.mxu2  ;;  %v679_v14 = vpop.f32.mrf.mxu3 }
 0x137   :  { %v686_v15 = vpack.c.bf16 %v684_v12, %v684_v12 }
 0x139   :  { %840 = vmatmul.bf16.vlgmr.msra.gmra.mxu1 %v686_v15 }
 0x1a6   :  { %v828_v16 = vpop.f32.mrf.mxu0 }
 0x1a7   :  { %v829_v19 = vadd.f32 %v1273_v18, %v828_v16 }
 0x1ae   :  { %v830_v17 = vpop.f32.mrf.mxu0 }
 0x1b6   :  { %v841_v20 = vpop.f32.mrf.mxu1 }
 0x1b7   :  { %v842_v21 = vadd.f32 %v841_v20, %v829_v19 }
 0x1b9   :  { %v845_v22 = vsub.f32 0.0, %v842_v21 }
 0x1bb   :  { %v846_v23 = vmul.f32 1.442695, %v845_v22 }
 0x1bd   :  { %1274 = vpow2.f32 %v846_v23 }
 0x1be   :  { %v843_v24 = vpop.f32.mrf.mxu1 }
 0x1c3   :  { %v1275_v25 = vpop.eup %1274 }
 0x1c4   :  { %v848_v26 = vadd.f32 1.0, %v1275_v25 }
 0x1c6   :  { %1276 = vrcp.f32 %v848_v26 }
 0x1cc   :  { %v1277_v30 = vpop.eup %1276 }
 0x1cd   :  { %851 = vst.msk [vmem:[%s1454_s7] sm:$0xff] %vm850_vm0, %v1277_v30 }
 0x1ce   :  { %856 = vsyncpa [#allocation3], 1 }
 0x1cf   :  { %857 = vsyncpa [#allocation5], 1 }

</bundles_post_ra>
